<compile_context>
chip_gen: v7x
topology: tpu7x:2x2x1
jax: 0.10.0
libtpu: 0.0.40
codegen_flags: <defaults>
</compile_context>

<pallas_src>
import math
import functools

import jax
import jax.numpy as jnp
from jax import lax
from jax.experimental import pallas as pl
from jax.experimental.pallas import tpu as pltpu


# ----------------------------------------------------------------------------
# in-kernel helpers (f32 math)
# ----------------------------------------------------------------------------

def _gelu_exact(x):
    # nn.GELU() default = exact erf-based GELU
    return 0.5 * x * (1.0 + lax.erf(x / jnp.sqrt(jnp.float32(2.0))))


def _layernorm(x, gamma, beta, eps=1e-5):
    mean = jnp.mean(x, axis=-1, keepdims=True)
    var = jnp.mean((x - mean) ** 2, axis=-1, keepdims=True)
    return (x - mean) * lax.rsqrt(var + jnp.float32(eps)) * gamma + beta


# ----------------------------------------------------------------------------
# kernel 0: fused QKV projection (single (tq,D)@(D,3D) matmul, scale folded into q)
# ----------------------------------------------------------------------------

def qkv_kernel(x_ref, wqkv_ref, bqkv_ref, q_ref, k_ref, v_ref,
               *, d_model, head_dim, compute_dtype):
    x = x_ref[0].astype(compute_dtype)                      # (tq, D)
    qkv = jnp.dot(x, wqkv_ref[...],
                  preferred_element_type=jnp.float32) + bqkv_ref[...]   # (tq, 3D) f32
    scale = jnp.float32(1.0 / math.sqrt(head_dim))
    q_ref[0] = (qkv[:, 0:d_model] * scale).astype(q_ref.dtype)   # fold 1/sqrt(dk) into q
    k_ref[0] = qkv[:, d_model:2 * d_model].astype(k_ref.dtype)
    v_ref[0] = qkv[:, 2 * d_model:3 * d_model].astype(v_ref.dtype)


# ----------------------------------------------------------------------------
# kernel 1: attention core + output projection
# ----------------------------------------------------------------------------

def attention_kernel(q_ref, k_ref, v_ref, mask_ref, wo_ref, bo_ref,
                     out_ref, *opt_attn_ref,
                     num_heads, head_dim, mask_heads, compute_dtype):
    attn_ref = opt_attn_ref[0] if opt_attn_ref else None

    q = q_ref[0]            # (tq, D), compute dtype, already scaled by 1/sqrt(dk)
    k = k_ref[0]            # (S, D),  compute dtype
    v = v_ref[0]            # (S, D),  compute dtype

    # hoist mask compare/select out of the head loop when it is head-broadcast
    if mask_heads == 1:
        neg = jnp.where(mask_ref[0, 0] > 0,
                        jnp.float32(0.0), jnp.float32(-1e30))    # (tq, S) additive bias

    ctx_parts = []
    for h in range(num_heads):                                   # lane-contiguous dk slices
        lo = h * head_dim
        hi = lo + head_dim
        s = jnp.einsum('qd,kd->qk', q[:, lo:hi], k[:, lo:hi],
                       preferred_element_type=jnp.float32)       # (tq, S), f32 on MXU
        if mask_heads == 1:
            s = s + neg
        else:
            s = jnp.where(mask_ref[0, h] > 0, s, jnp.float32(-1e30))

        s = s - jnp.max(s, axis=-1, keepdims=True)
        e = jnp.exp(s)
        inv = pl.reciprocal(jnp.sum(e, axis=-1, keepdims=True), approx=True)
        p = (e * inv).astype(compute_dtype)                      # single cast, reused
        if attn_ref is not None:
            attn_ref[0, h] = p.astype(attn_ref.dtype)            # no-op cast when dtypes match

        ctx_parts.append(jnp.dot(p, v[:, lo:hi],
                                 preferred_element_type=jnp.float32))   # (tq, dk) f32

    ctx = jnp.concatenate(ctx_parts, axis=-1)                    # (tq, D) f32
    out = jnp.dot(ctx.astype(compute_dtype), wo_ref[...],
                  preferred_element_type=jnp.float32)            # one K=D MXU pass
    out_ref[0] = (out + bo_ref[...]).astype(out_ref.dtype)


# ----------------------------------------------------------------------------
# kernel 2a: residual + LN1 + FFN (weights resident) + residual + LN2
# ----------------------------------------------------------------------------

def ffn_kernel_resident(x_ref, attn_out_ref, w1_ref, b1_ref, w2_ref, b2_ref,
                        g1_ref, be1_ref, g2_ref, be2_ref, y_ref, *, compute_dtype):
    h1 = _layernorm(x_ref[0] + attn_out_ref[0], g1_ref[...], be1_ref[...])   # f32
    h1c = h1.astype(compute_dtype)
    ff = jnp.dot(h1c, w1_ref[...], preferred_element_type=jnp.float32) + b1_ref[...]
    ff = _gelu_exact(ff)
    out2 = jnp.dot(ff.astype(compute_dtype), w2_ref[...],
                   preferred_element_type=jnp.float32) + b2_ref[...]
    y_ref[0] = _layernorm(h1 + out2, g2_ref[...], be2_ref[...]).astype(y_ref.dtype)


# ----------------------------------------------------------------------------
# kernel 2b: residual + LN1 + FFN (tiled over DFF, accumulator) + residual + LN2
# ----------------------------------------------------------------------------

def ffn_kernel_tiled(x_ref, attn_out_ref, w1_ref, b1_ref, w2_ref, b2_ref,
                     g1_ref, be1_ref, g2_ref, be2_ref,
                     y_ref, h1_f32, h1_cd, acc, *, compute_dtype):
    f = pl.program_id(2)
    nf = pl.num_programs(2)

    @pl.when(f == 0)
    def _():
        h1 = _layernorm(x_ref[0] + attn_out_ref[0], g1_ref[...], be1_ref[...])
        h1_f32[...] = h1                          # f32 copy for final residual / LN2
        h1_cd[...] = h1.astype(compute_dtype)     # compute-dtype copy, cast once
        acc[...] = jnp.zeros_like(acc)

    ff = jnp.dot(h1_cd[...], w1_ref[...], preferred_element_type=jnp.float32) + b1_ref[...]
    ff = _gelu_exact(ff)
    acc[...] += jnp.dot(ff.astype(compute_dtype), w2_ref[...],
                        preferred_element_type=jnp.float32)

    @pl.when(f == nf - 1)
    def _():
        out = _layernorm(h1_f32[...] + acc[...] + b2_ref[...],
                         g2_ref[...], be2_ref[...])
        y_ref[0] = out.astype(y_ref.dtype)


# ----------------------------------------------------------------------------
# wrapper
# ----------------------------------------------------------------------------

def _default_vmem_limit():
    # ~3/4 of physical per-core VMEM, capped at 100 MiB:
    #   v7x (64 MiB)  -> 48 MiB, v5e/v6e (128 MiB) -> 96 MiB.
    try:
        info = pltpu.get_tpu_info()
        cap = getattr(info, "vmem_capacity_bytes", None)
        if cap:
            return int(min(cap * 3 // 4, 100 * 1024 * 1024))
    except Exception:
        pass
    return 64 * 1024 * 1024


def transformer_encoder_layer(x, mask, params, num_heads, *,
                              compute_dtype=jnp.bfloat16,
                              attn_weights_dtype=jnp.bfloat16,
                              return_attn_weights=True,
                              q_tile=256, dff_tile=1024,
                              ffn_resident=None,
                              vmem_limit_bytes=None):
    B, S, D = x.shape
    H = num_heads
    assert D % H == 0
    dk = D // H
    DFF = params['w1'].shape[1]

    if vmem_limit_bytes is None:
        vmem_limit_bytes = _default_vmem_limit()

    # normalize mask to (B, mask_heads, S, S) with mask_heads in {1, H}; carry as bf16
    if mask.ndim == 3:
        mask = mask[:, None, :, :]
    assert mask.shape[0] == B and mask.shape[2] == S and mask.shape[3] == S
    mask_heads = mask.shape[1]
    assert mask_heads in (1, H)
    mask = mask.astype(jnp.bfloat16)

    # NOTE(v7x): keep B * (S // tq) >= 2 so both TensorCores get work.
    tq = S if S <= q_tile else q_tile
    assert S % tq == 0, "sequence length must be a multiple of the q tile"
    tf = DFF if DFF <= dff_tile else dff_tile
    assert DFF % tf == 0, "dim_feedforward must be a multiple of the DFF tile"

    cd = compute_dtype
    cd_bytes = jnp.dtype(cd).itemsize
    f32 = jnp.float32

    wq = params['wq'].astype(cd); bq = params['bq'].astype(f32)
    wk = params['wk'].astype(cd); bk = params['bk'].astype(f32)
    wv = params['wv'].astype(cd); bv = params['bv'].astype(f32)
    wqkv = jnp.concatenate([wq, wk, wv], axis=1)            # (D, 3D)
    bqkv = jnp.concatenate([bq, bk, bv], axis=1)            # (1, 3D)
    wo = params['wo'].astype(cd); bo = params['bo'].astype(f32)
    w1 = params['w1'].astype(cd); b1 = params['b1'].astype(f32)
    w2 = params['w2'].astype(cd); b2 = params['b2'].astype(f32)
    g1 = params['g1'].astype(f32); be1 = params['be1'].astype(f32)
    g2 = params['g2'].astype(f32); be2 = params['be2'].astype(f32)

    x = x.astype(f32)

    # ---------------- kernel 0: fused QKV projection ----------------
    qkv_cost = pl.CostEstimate(
        flops=int(6 * B * S * D * D),
        transcendentals=0,
        bytes_accessed=int(B * S * D * 4 + 3 * D * D * cd_bytes
                           + 3 * D * 4 + 3 * B * S * D * cd_bytes))

    q, k, v = pl.pallas_call(
        functools.partial(qkv_kernel, d_model=D, head_dim=dk, compute_dtype=cd),
        grid=(B, S // tq),
        in_specs=(
            pl.BlockSpec((1, tq, D), lambda b, r: (b, r, 0)),
            pl.BlockSpec((D, 3 * D), lambda b, r: (0, 0)),
            pl.BlockSpec((1, 3 * D), lambda b, r: (0, 0)),
        ),
        out_specs=(
            pl.BlockSpec((1, tq, D), lambda b, r: (b, r, 0)),
            pl.BlockSpec((1, tq, D), lambda b, r: (b, r, 0)),
            pl.BlockSpec((1, tq, D), lambda b, r: (b, r, 0)),
        ),
        out_shape=(
            jax.ShapeDtypeStruct((B, S, D), cd),
            jax.ShapeDtypeStruct((B, S, D), cd),
            jax.ShapeDtypeStruct((B, S, D), cd),
        ),
        compiler_params=pltpu.CompilerParams(
            dimension_semantics=("parallel", "parallel"),
            vmem_limit_bytes=vmem_limit_bytes),
        cost_estimate=qkv_cost,
    )(x, wqkv, bqkv)

    # ---------------- kernel 1: attention + output projection ----------------
    emit_attn = bool(return_attn_weights)
    attn_bytes = (int(B * H * S * S * jnp.dtype(attn_weights_dtype).itemsize)
                  if emit_attn else 0)
    attn_cost = pl.CostEstimate(
        flops=int(4 * B * S * S * D + 2 * B * S * D * D),
        transcendentals=int(B * H * S * S),
        bytes_accessed=int(3 * B * S * D * cd_bytes
                           + B * mask_heads * S * S * 2
                           + D * D * cd_bytes + D * 4
                           + B * S * D * 4 + attn_bytes))

    if emit_attn:
        attn_out_shape = (
            jax.ShapeDtypeStruct((B, S, D), jnp.float32),
            jax.ShapeDtypeStruct((B, H, S, S), attn_weights_dtype),
        )
        attn_out_specs = (
            pl.BlockSpec((1, tq, D), lambda b, qi: (b, qi, 0)),
            pl.BlockSpec((1, H, tq, S), lambda b, qi: (b, 0, qi, 0)),
        )
    else:
        attn_out_shape = jax.ShapeDtypeStruct((B, S, D), jnp.float32)
        attn_out_specs = pl.BlockSpec((1, tq, D), lambda b, qi: (b, qi, 0))

    attn_results = pl.pallas_call(
        functools.partial(attention_kernel, num_heads=H, head_dim=dk,
                          mask_heads=mask_heads, compute_dtype=cd),
        grid=(B, S // tq),
        in_specs=(
            pl.BlockSpec((1, tq, D), lambda b, qi: (b, qi, 0)),            # q tile
            pl.BlockSpec((1, S, D), lambda b, qi: (b, 0, 0)),              # k (per batch)
            pl.BlockSpec((1, S, D), lambda b, qi: (b, 0, 0)),              # v (per batch)
            pl.BlockSpec((1, mask_heads, tq, S), lambda b, qi: (b, 0, qi, 0)),
            pl.BlockSpec((D, D), lambda b, qi: (0, 0)),                    # wo
            pl.BlockSpec((1, D), lambda b, qi: (0, 0)),                    # bo
        ),
        out_specs=attn_out_specs,
        out_shape=attn_out_shape,
        compiler_params=pltpu.CompilerParams(
            dimension_semantics=("parallel", "parallel"),
            vmem_limit_bytes=vmem_limit_bytes),
        cost_estimate=attn_cost,
    )(q, k, v, mask, wo, bo)

    if emit_attn:
        attn_out, attn_w = attn_results
    else:
        attn_out, attn_w = attn_results, None

    # ---------------- kernel 2: LN1 + FFN + LN2 ----------------
    # keep w1/w2 fully resident (constant index maps) when they comfortably fit VMEM,
    # otherwise tile the DFF axis with an f32 accumulator.
    if ffn_resident is None:
        ffn_resident = (4 * D * DFF * cd_bytes) * 2 <= vmem_limit_bytes

    ffn_cost = pl.CostEstimate(
        flops=int(4 * B * S * D * DFF),
        transcendentals=int(B * S * DFF),
        bytes_accessed=int(2 * B * S * D * 4 + 2 * D * DFF * cd_bytes
                           + (DFF + 5 * D) * 4 + B * S * D * 4))

    if ffn_resident:
        y = pl.pallas_call(
            functools.partial(ffn_kernel_resident, compute_dtype=cd),
            grid=(B, S // tq),
            in_specs=(
                pl.BlockSpec((1, tq, D), lambda b, r: (b, r, 0)),   # x (residual)
                pl.BlockSpec((1, tq, D), lambda b, r: (b, r, 0)),   # attn_out
                pl.BlockSpec((D, DFF), lambda b, r: (0, 0)),        # w1 (resident)
                pl.BlockSpec((1, DFF), lambda b, r: (0, 0)),        # b1
                pl.BlockSpec((DFF, D), lambda b, r: (0, 0)),        # w2 (resident)
                pl.BlockSpec((1, D), lambda b, r: (0, 0)),          # b2
                pl.BlockSpec((1, D), lambda b, r: (0, 0)),          # g1
                pl.BlockSpec((1, D), lambda b, r: (0, 0)),          # be1
                pl.BlockSpec((1, D), lambda b, r: (0, 0)),          # g2
                pl.BlockSpec((1, D), lambda b, r: (0, 0)),          # be2
            ),
            out_specs=pl.BlockSpec((1, tq, D), lambda b, r: (b, r, 0)),
            out_shape=jax.ShapeDtypeStruct((B, S, D), jnp.float32),
            compiler_params=pltpu.CompilerParams(
                dimension_semantics=("parallel", "parallel"),
                vmem_limit_bytes=vmem_limit_bytes),
            cost_estimate=ffn_cost,
        )(x, attn_out, w1, b1, w2, b2, g1, be1, g2, be2)
    else:
        y = pl.pallas_call(
            functools.partial(ffn_kernel_tiled, compute_dtype=cd),
            grid=(B, S // tq, DFF // tf),
            in_specs=(
                pl.BlockSpec((1, tq, D), lambda b, r, f: (b, r, 0)),   # x (residual)
                pl.BlockSpec((1, tq, D), lambda b, r, f: (b, r, 0)),   # attn_out
                pl.BlockSpec((D, tf), lambda b, r, f: (0, f)),         # w1 column tile
                pl.BlockSpec((1, tf), lambda b, r, f: (0, f)),         # b1 tile
                pl.BlockSpec((tf, D), lambda b, r, f: (f, 0)),         # w2 row tile
                pl.BlockSpec((1, D), lambda b, r, f: (0, 0)),          # b2
                pl.BlockSpec((1, D), lambda b, r, f: (0, 0)),          # g1
                pl.BlockSpec((1, D), lambda b, r, f: (0, 0)),          # be1
                pl.BlockSpec((1, D), lambda b, r, f: (0, 0)),          # g2
                pl.BlockSpec((1, D), lambda b, r, f: (0, 0)),          # be2
            ),
            out_specs=pl.BlockSpec((1, tq, D), lambda b, r, f: (b, r, 0)),
            out_shape=jax.ShapeDtypeStruct((B, S, D), jnp.float32),
            scratch_shapes=[pltpu.VMEM((tq, D), jnp.float32),   # h1 (post-LN1, f32)
                            pltpu.VMEM((tq, D), cd),            # h1 in compute dtype
                            pltpu.VMEM((tq, D), jnp.float32)],  # FFN accumulator
            compiler_params=pltpu.CompilerParams(
                dimension_semantics=("parallel", "parallel", "arbitrary"),
                vmem_limit_bytes=vmem_limit_bytes),
            cost_estimate=ffn_cost,
        )(x, attn_out, w1, b1, w2, b2, g1, be1, g2, be2)

    return y, attn_w


# ----------------------------------------------------------------------------
# pure-JAX reference (PyTorch eval-mode semantics, dropout = identity)
# ----------------------------------------------------------------------------

def reference_forward(x, mask, params, num_heads):
    B, S, D = x.shape
    H = num_heads
    dk = D // H

    def lin(a, w, b):
        return a @ w + b

    q = lin(x, params['wq'], params['bq']).reshape(B, S, H, dk).transpose(0, 2, 1, 3)
    k = lin(x, params['wk'], params['bk']).reshape(B, S, H, dk).transpose(0, 2, 1, 3)
    v = lin(x, params['wv'], params['bv']).reshape(B, S, H, dk).transpose(0, 2, 1, 3)

    scores = jnp.einsum('bhqd,bhkd->bhqk', q, k) / jnp.sqrt(jnp.float32(dk))
    inv = (1.0 - mask)
    scores = scores + jnp.where(inv > 0, jnp.finfo(jnp.float32).min, 0.0)
    attn = jax.nn.softmax(scores, axis=-1)
    ctx = jnp.einsum('bhqk,bhkd->bhqd', attn, v).transpose(0, 2, 1, 3).reshape(B, S, D)
    attn_out = lin(ctx, params['wo'], params['bo'])

    def ln(a, g, b, eps=1e-5):
        m = jnp.mean(a, axis=-1, keepdims=True)
        var = jnp.mean((a - m) ** 2, axis=-1, keepdims=True)
        return (a - m) * lax.rsqrt(var + eps) * g + b

    h1 = ln(x + attn_out, params['g1'], params['be1'])
    ff = lin(h1, params['w1'], params['b1'])
    ff = 0.5 * ff * (1.0 + lax.erf(ff / jnp.sqrt(jnp.float32(2.0))))
    ff = lin(ff, params['w2'], params['b2'])
    out = ln(h1 + ff, params['g2'], params['be2'])
    return out, attn


if __name__ == "__main__":
    B, S, D, H, DFF = 2, 8, 32, 4, 64

    key = jax.random.PRNGKey(0)
    keys = jax.random.split(key, 16)

    def w(k, shape, scale=0.05):
        return (scale * jax.random.normal(k, shape)).astype(jnp.float32)

    params = {
        'wq': w(keys[0], (D, D)),    'bq': w(keys[1], (1, D)),
        'wk': w(keys[2], (D, D)),    'bk': w(keys[3], (1, D)),
        'wv': w(keys[4], (D, D)),    'bv': w(keys[5], (1, D)),
        'wo': w(keys[6], (D, D)),    'bo': w(keys[7], (1, D)),
        'w1': w(keys[8], (D, DFF)),  'b1': w(keys[9], (1, DFF)),
        'w2': w(keys[10], (DFF, D)), 'b2': w(keys[11], (1, D)),
        'g1': jnp.ones((1, D), jnp.float32),  'be1': jnp.zeros((1, D), jnp.float32),
        'g2': jnp.ones((1, D), jnp.float32),  'be2': jnp.zeros((1, D), jnp.float32),
    }

    x = jax.random.normal(keys[12], (B, S, D), dtype=jnp.float32)
    # causal-style mask (1.0 attend, 0.0 masked); kernel takes the head-broadcast form
    causal = jnp.tril(jnp.ones((S, S), jnp.float32))
    mask_bcast = jnp.broadcast_to(causal, (B, 1, S, S)).astype(jnp.float32)
    mask_full = jnp.broadcast_to(causal, (B, H, S, S)).astype(jnp.float32)

    y_ref, attn_ref = reference_forward(x, mask_full, params, num_heads=H)

    # f32 compute path (tighter check, f32 attention weights)
    y32, a32 = transformer_encoder_layer(x, mask_bcast, params, num_heads=H,
                                         compute_dtype=jnp.float32,
                                         attn_weights_dtype=jnp.float32)
    y32 = jax.block_until_ready(y32)
    a32 = jax.block_until_ready(a32)
    assert jnp.allclose(y32, y_ref, atol=1e-2, rtol=1e-2), "f32 output mismatch"
    assert jnp.allclose(a32, attn_ref, atol=1e-2, rtol=1e-2), "f32 attn mismatch"

    # bf16 compute path, bf16 attention weights (defaults; f32 accumulation)
    ybf, abf = transformer_encoder_layer(x, mask_bcast, params, num_heads=H)
    ybf = jax.block_until_ready(ybf)
    abf = jax.block_until_ready(abf)
    assert jnp.allclose(ybf, y_ref, atol=5e-2, rtol=5e-2), "bf16 output mismatch"
    assert jnp.allclose(abf.astype(jnp.float32), attn_ref,
                        atol=3e-2, rtol=3e-2), "bf16 attn mismatch"

    # no-attn-weights path + forced DFF-tiled FFN path (exercises both code paths)
    ynw, anw = transformer_encoder_layer(x, mask_bcast, params, num_heads=H,
                                         return_attn_weights=False,
                                         ffn_resident=False)
    ynw = jax.block_until_ready(ynw)
    assert anw is None
    assert jnp.allclose(ynw, y_ref, atol=5e-2, rtol=5e-2), "no-weights output mismatch"

    print("KERNEL_OK")
</pallas_src>

<mosaic_0001>
module attributes {stable_mosaic.version = 11 : i64} {
  func.func @qkv_kernel(%arg0: i32, %arg1: i32, %arg2: memref<1x8x32xf32, #tpu.memory_space<vmem>>, %arg3: memref<32x96xf32, #tpu.memory_space<vmem>>, %arg4: memref<1x96xf32, #tpu.memory_space<vmem>>, %arg5: memref<1x8x32xf32, #tpu.memory_space<vmem>>, %arg6: memref<1x8x32xf32, #tpu.memory_space<vmem>>, %arg7: memref<1x8x32xf32, #tpu.memory_space<vmem>>) attributes {dimension_semantics = [#tpu.dimension_semantics<parallel>, #tpu.dimension_semantics<parallel>], iteration_bounds = array<i64: 2, 1>, scalar_prefetch = 0 : i64, scratch_operands = 0 : i64, tpu.core_type = #tpu.core_type<tc>, window_params = [{transform_indices = @transform_0, window_bounds = array<i64: 1, 8, 32>}, {pipeline_mode = #tpu.pipeline_mode<synchronous>, transform_indices = @transform_1, window_bounds = array<i64: 32, 96>}, {pipeline_mode = #tpu.pipeline_mode<synchronous>, transform_indices = @transform_2, window_bounds = array<i64: 1, 96>}, {transform_indices = @transform_3, window_bounds = array<i64: 1, 8, 32>}, {transform_indices = @transform_4, window_bounds = array<i64: 1, 8, 32>}, {transform_indices = @transform_5, window_bounds = array<i64: 1, 8, 32>}]} {
    %c0 = arith.constant 0 : index
    %c0_0 = arith.constant 0 : index
    %c0_1 = arith.constant 0 : index
    %0 = vector.load %arg2[%c0, %c0_0, %c0_1] : memref<1x8x32xf32, #tpu.memory_space<vmem>>, vector<1x8x32xf32>
    %1 = vector.shape_cast %0 : vector<1x8x32xf32> to vector<8x32xf32>
    %c0_2 = arith.constant 0 : index
    %c0_3 = arith.constant 0 : index
    %2 = vector.load %arg3[%c0_2, %c0_3] : memref<32x96xf32, #tpu.memory_space<vmem>>, vector<32x96xf32>
    %cst = arith.constant dense<0.000000e+00> : vector<8x96xf32>
    %3 = tpu.matmul %1, %2, %cst {dimension_numbers = #tpu.dot_dimension_numbers<[1], [0], [0], [1], [0, 0, 1, 1], [], []>} : vector<8x32xf32>, vector<32x96xf32>, vector<8x96xf32> -> vector<8x96xf32>
    %c0_4 = arith.constant 0 : index
    %c0_5 = arith.constant 0 : index
    %4 = vector.load %arg4[%c0_4, %c0_5] : memref<1x96xf32, #tpu.memory_space<vmem>>, vector<1x96xf32>
    %5 = vector.broadcast %4 : vector<1x96xf32> to vector<8x96xf32>
    %6 = arith.addf %3, %5 : vector<8x96xf32>
    %7 = vector.extract_strided_slice %6 {offsets = [0, 0], sizes = [8, 32], strides = [1, 1]} : vector<8x96xf32> to vector<8x32xf32>
    %cst_6 = arith.constant 0.353553385 : f32
    %8 = vector.broadcast %cst_6 : f32 to vector<8x32xf32>
    %9 = arith.mulf %7, %8 : vector<8x32xf32>
    %c0_7 = arith.constant 0 : index
    %c0_8 = arith.constant 0 : index
    %c0_9 = arith.constant 0 : index
    %10 = vector.load %arg5[%c0_7, %c0_8, %c0_9] : memref<1x8x32xf32, #tpu.memory_space<vmem>>, vector<1x8x32xf32>
    %11 = vector.shape_cast %10 : vector<1x8x32xf32> to vector<8x32xf32>
    %12 = vector.shape_cast %9 : vector<8x32xf32> to vector<1x8x32xf32>
    tpu.vector_store %arg5[%c0_7, %c0_8, %c0_9], %12 {strides = array<i32>} : memref<1x8x32xf32, #tpu.memory_space<vmem>>, vector<1x8x32xf32>,
    %13 = vector.extract_strided_slice %6 {offsets = [0, 32], sizes = [8, 32], strides = [1, 1]} : vector<8x96xf32> to vector<8x32xf32>
    %c0_10 = arith.constant 0 : index
    %c0_11 = arith.constant 0 : index
    %c0_12 = arith.constant 0 : index
    %14 = vector.load %arg6[%c0_10, %c0_11, %c0_12] : memref<1x8x32xf32, #tpu.memory_space<vmem>>, vector<1x8x32xf32>
    %15 = vector.shape_cast %14 : vector<1x8x32xf32> to vector<8x32xf32>
    %16 = vector.shape_cast %13 : vector<8x32xf32> to vector<1x8x32xf32>
    tpu.vector_store %arg6[%c0_10, %c0_11, %c0_12], %16 {strides = array<i32>} : memref<1x8x32xf32, #tpu.memory_space<vmem>>, vector<1x8x32xf32>,
    %17 = vector.extract_strided_slice %6 {offsets = [0, 64], sizes = [8, 32], strides = [1, 1]} : vector<8x96xf32> to vector<8x32xf32>
    %c0_13 = arith.constant 0 : index
    %c0_14 = arith.constant 0 : index
    %c0_15 = arith.constant 0 : index
    %18 = vector.load %arg7[%c0_13, %c0_14, %c0_15] : memref<1x8x32xf32, #tpu.memory_space<vmem>>, vector<1x8x32xf32>
    %19 = vector.shape_cast %18 : vector<1x8x32xf32> to vector<8x32xf32>
    %20 = vector.shape_cast %17 : vector<8x32xf32> to vector<1x8x32xf32>
    tpu.vector_store %arg7[%c0_13, %c0_14, %c0_15], %20 {strides = array<i32>} : memref<1x8x32xf32, #tpu.memory_space<vmem>>, vector<1x8x32xf32>,
    return
  }
  func.func @transform_0(%arg0: i32, %arg1: i32) -> (i32, i32, i32) {
    %c0_i32 = arith.constant 0 : i32
    %c0_i32_0 = arith.constant 0 : i32
    return %arg0, %arg1, %c0_i32 : i32, i32, i32
  }
  func.func @transform_1(%arg0: i32, %arg1: i32) -> (i32, i32) {
    %c0_i32 = arith.constant 0 : i32
    %c0_i32_0 = arith.constant 0 : i32
    %c0_i32_1 = arith.constant 0 : i32
    return %c0_i32, %c0_i32_0 : i32, i32
  }
  func.func @transform_2(%arg0: i32, %arg1: i32) -> (i32, i32) {
    %c0_i32 = arith.constant 0 : i32
    %c0_i32_0 = arith.constant 0 : i32
    %c0_i32_1 = arith.constant 0 : i32
    return %c0_i32, %c0_i32_0 : i32, i32
  }
  func.func @transform_3(%arg0: i32, %arg1: i32) -> (i32, i32, i32) {
    %c0_i32 = arith.constant 0 : i32
    %c0_i32_0 = arith.constant 0 : i32
    return %arg0, %arg1, %c0_i32 : i32, i32, i32
  }
  func.func @transform_4(%arg0: i32, %arg1: i32) -> (i32, i32, i32) {
    %c0_i32 = arith.constant 0 : i32
    %c0_i32_0 = arith.constant 0 : i32
    return %arg0, %arg1, %c0_i32 : i32, i32, i32
  }
  func.func @transform_5(%arg0: i32, %arg1: i32) -> (i32, i32, i32) {
    %c0_i32 = arith.constant 0 : i32
    %c0_i32_0 = arith.constant 0 : i32
    return %arg0, %arg1, %c0_i32 : i32, i32, i32
  }
}

</mosaic_0001>

<bundles_post_ra>
// kernel: tpu_custom_call.1
= control target key start
LH: loop header
LB: loop body
LE: loop exit
PB: predicated region body
PF: predicated region fallthrough
CT: control target
= control target key end

     0   :  { %11 = vsyncpa [#allocation3], 0  ;;  %s1376_s0 = inlined_call_operand.hbm [shape: f32[2,8,32], index: 0, kind: input, shape index: {}]   ;;  %s1377_s1 = inlined_call_operand.hbm [shape: f32[32,96], index: 1, kind: input, shape index: {}]   ;;  %s1378_s2 = inlined_call_operand.hbm [shape: f32[1,96], index: 2, kind: input, shape index: {}]   ;;  %s1379_s3 = inlined_call_operand.hbm [shape: f32[2,8,32], index: 3, kind: output, shape index: {0}]   ;;  %s1380_s4 = inlined_call_operand.hbm [shape: f32[2,8,32], index: 4, kind: output, shape index: {1}]   ;;  %s1381_s5 = inlined_call_operand.hbm [shape: f32[2,8,32], index: 5, kind: output, shape index: {2}]  }
   0x1   :  { %13 = vsyncpa [#allocation3 + $0x1], 0 }
   0x2   :  { %14 = vsyncpa [#allocation6], 0 }
   0x3   :  { %15 = vsyncpa [#allocation4], 0 }
   0x4   :  { %17 = vsyncpa [#allocation4 + $0x1], 0 }
   0x5   :  { %18 = vsyncpa [#allocation10], 0 }
   0x6   :  { %20 = vsyncpa [#allocation10 + $0x1], 0  ;;  %s1042_s18 = smov 0   ;;  %s1044_s19 = smov 0  }
   0x7   :  { %s1046_s20 = smov 0   ;;  %s1048_s21 = smov 0  }
   0x8   :  { %s1050_s22 = smov 0   ;;  %s1052_s23 = smov 0  }
   0x9 LB: > { %s1073_s24 = sadd.s32 4294967295, %s997_s23   ;;  %s619_s25 = sadd.s32 4294967294, %s997_s23   ;;  %s997_s23 = sphi %s1052_s23, %s26_s23   ;;  %s993_s22 = sphi %s1050_s22, %s1402_s22   ;;  %s989_s21 = sphi %s1048_s21, %s1401_s21   ;;  %s985_s20 = sphi %s1046_s20, %s1400_s20   ;;  %s981_s19 = sphi %s1044_s19, %s1399_s19   ;;  %s977_s18 = sphi %s1042_s18, %s1398_s18  }
   0xa   : > { %p60_p0 = scmp.ne.s32.totalorder %s981_s19, %s977_s18  ;;  %p1382_p1 = scmp.eq.s32.totalorder %s1073_s24, 0 }
   0xb   : > { %p134_p3 = scmp.eq.s32.totalorder %s619_s25, 1  ;;  %p620_p5 = scmp.ge.s32.totalorder %s997_s23, 1 }
   0xc   : > { %p1084_p4 = por %p1382_p1, %p60_p0  ;;  %p197_p7 = scmp.lt.s32.totalorder %s997_s23, 3 }
   0xd   : > { %p1089_p6 = por %p134_p3, %p60_p0  ;;  %s999_s29 = smov [#allocation5]  }
   0xe   : > { %s1385_s26 = scalar_select %p1084_p4, 1, 0 }
   0xf   : > { %s1386_s27 = scalar_select %p1089_p6, 1, 0 }
  0x10   : > { %p1094_p8 = pnand %p620_p5, %p197_p7  ;;  %s209_s30 = sshll.u32 %s999_s29, 4  ;;  %s1098_s30 = int_to_ptr.vmem [resolvable:$true] %s209_s30 }
  0x11   : > { %s1000_s7 = smov [#allocation7]   ;;  %s765_s11 = scalar_lea.hbm %s1377_s1, 512 }
  0x12   : > { %p681_p9 = pneg %p1094_p8  ;;  %s223_s8 = sshll.u32 %s1000_s7, 4  ;;  %s1109_s8 = int_to_ptr.vmem [resolvable:$true] %s223_s8 }
  0x13   : > { %p766_p12 = scmp.ne.s32.totalorder %s1377_s1, %s765_s11  ;;  %p772_p5 = scmp.lt.u32.totalorder %s765_s11, %s1377_s1 }
  0x14   : > { %p1105_p11 = pnand %p681_p9, %p1382_p1 }
  0x16   : > { %p767_p13 = pneg %p1105_p11 }
  0x18   : > { %p768_p0 = pnand %p767_p13, %p766_p12 }
  0x1a   : > { %p769_p3 = pneg %p768_p0 }
  0x1c   : > { %p774_p7 = pnand %p772_p5, %p769_p3 }
  0x1e   : > { %777 = shalt.err (!%p774_p7)
}
  0x1f   : > { %s778_s16 = scalar_lea.vmem %s1098_s30, 512  ;;  %p786_p2 = scmp.lt.s32.totalorder %s1098_s30, %s1098_s30 }
  0x20   : > { %p779_p9 = scmp.ne.s32.totalorder %s1098_s30, %s778_s16  ;;  %p787_p12 = scmp.lt.s32.totalorder %s778_s16, %s778_s16 }
  0x22   : > { %p781_p10 = pnand %p779_p9, %p767_p13  ;;  %p788_p0 = por %p787_p12, %p786_p2 }
  0x24   : > { %p782_p1 = pneg %p781_p10 }
  0x26   : > { %p789_p6 = pnand %p788_p0, %p782_p1 }
  0x28   : > { %792 = shalt.err (!%p789_p6)
}
  0x29   : > { %s1001_s17 = smov 128   ;;  %s1002_s29 = smov 8  }
  0x2a   : > { %684 = dma.hbm_to_vmem [thread:$0]  (!%p1105_p11), %s1377_s1, 512, %s1098_s30, [#allocation6], %s1001_s17, %s1001_s17, %s1002_s29  }
  0x2b   : > { %s793_s12 = scalar_lea.hbm %s1378_s2, 16 }
  0x2c   : > { %p794_p2 = scmp.ne.s32.totalorder %s1378_s2, %s793_s12  ;;  %p800_p10 = scmp.lt.u32.totalorder %s793_s12, %s1378_s2 }
  0x2e   : > { %p796_p1 = pnand %p794_p2, %p767_p13 }
  0x30   : > { %p797_p6 = pneg %p796_p1 }
  0x32   : > { %p802_p3 = pnand %p800_p10, %p797_p6 }
  0x34   : > { %805 = shalt.err (!%p802_p3)
}
  0x35   : > { %s806_s30 = scalar_lea.vmem %s1109_s8, 16  ;;  %s813_s17 = scalar_lea.vmem %s1109_s8, 32 }
  0x36   : > { %p807_p5 = scmp.ne.s32.totalorder %s1109_s8, %s806_s30  ;;  %p814_p12 = scmp.lt.s32.totalorder %s1109_s8, %s1109_s8 }
  0x37   : > { %p815_p0 = scmp.lt.s32.totalorder %s813_s17, %s806_s30 }
  0x38   : > { %p809_p7 = pnand %p807_p5, %p767_p13 }
  0x39   : > { %p816_p2 = por %p815_p0, %p814_p12 }
  0x3a   : > { %p810_p9 = pneg %p809_p7 }
  0x3c   : > { %p817_p1 = pnand %p816_p2, %p810_p9 }
  0x3e   : > { %820 = shalt.err (!%p817_p1)
}
  0x3f   : > { %687 = dma.hbm_to_vmem [thread:$0]  (!%p1105_p11), %s1378_s2, 16, %s1109_s8, [#allocation6]  }
  0x40   : > { %s38_s9 = sadd.s32 1, %s993_s22  ;;  %s47_s10 = sadd.s32 1, %s985_s20 }
  0x41   : > { %p40_p13 = scmp.ge.s32.totalorder %s38_s9, 2  ;;  %p54_p6 = scmp.ne.s32.totalorder %s985_s20, %s981_s19 }
  0x42   : > { %p55_p10 = scmp.eq.s32.totalorder %s997_s23, 0  ;;  %p704_p3 = scmp.lt.s32.totalorder %s997_s23, 2 }
  0x43   : > { %s1404_s9 = smov (%p40_p13, %s38_s9), 0  ;;  %p1389_p7 = scmp.eq.s32.totalorder %s1073_s24, 1 }
  0x44   : > { %p56_p5 = por %p55_p10, %p54_p6  ;;  %s42_s11 = ssub.s32 %s993_s22, %s1404_s9 }
  0x45   : > { %p1174_p9 = por %p1389_p7, %p54_p6  ;;  %s234_s12 = sand.u32 1, %s985_s20  }
  0x46   : > { %p45_p12 = scmp.eq.s32.totalorder %s42_s11, 0  ;;  %s624_s8 = sshll.u32 %s234_s12, 3 }
  0x47   : > { %s1390_s6 = scalar_select %p1174_p9, 1, 0 }
  0x48   : > { %s625_s13 = sshll.u32 %s993_s22, 7  ;;  %s238_s17 = scalar_lea.vmem [#allocation2], %s624_s8 }
  0x49   : > { %s1183_s14 = scalar_select %p45_p12, %s985_s20, %s47_s10  }
  0x4a   : > { %s1188_s30 = scalar_lea.hbm %s1376_s0, %s625_s13  ;;  %s246_s29 = sshll.u32 %s238_s17, 4  ;;  %s1196_s29 = int_to_ptr.vmem [resolvable:$true] %s246_s29 }
  0x4b   : > { %p1192_p11 = pnand %p704_p3, %p56_p5  ;;  %s235_s10 = scalar_lea.sflag [#allocation3], %s234_s12 }
  0x4c   : > { %s821_s11 = scalar_lea.hbm %s1188_s30, 128  ;;  %s826_s15 = scalar_lea.hbm %s1376_s0, 256 }
  0x4d   : > { %p822_p0 = scmp.ne.s32.totalorder %s1188_s30, %s821_s11  ;;  %p823_p2 = pneg %p1192_p11 }
  0x4e   : > { %p827_p6 = scmp.lt.u32.totalorder %s1188_s30, %s1376_s0  ;;  %p828_p10 = scmp.lt.u32.totalorder %s826_s15, %s821_s11 }
  0x4f   : > { %p824_p1 = pnand %p823_p2, %p822_p0  ;;  %p830_p5 = scmp.lt.u32.totalorder %s821_s11, %s1188_s30 }
  0x50   : > { %p829_p3 = por %p828_p10, %p827_p6 }
  0x51   : > { %p825_p13 = pneg %p824_p1 }
  0x52   : > { %p831_p7 = por %p830_p5, %p829_p3 }
  0x54   : > { %p832_p12 = pnand %p831_p7, %p825_p13 }
  0x56   : > { %835 = shalt.err (!%p832_p12)
}
  0x57   : > { %s836_s12 = scalar_lea.vmem %s1196_s29, 128  ;;  %s1003_s8 = smov [#allocation2]  }
  0x58   : > { %p837_p0 = scmp.ne.s32.totalorder %s1196_s29, %s836_s12  ;;  %s841_s13 = sshll.u32 %s1003_s8, 4  ;;  %s842_s13 = int_to_ptr.vmem [resolvable:$false] %s841_s13 }
  0x59   : > { %s843_s16 = scalar_lea.vmem %s842_s13, 256  ;;  %p844_p4 = scmp.lt.s32.totalorder %s1196_s29, %s842_s13 }
  0x5a   : > { %p839_p1 = pnand %p837_p0, %p823_p2  ;;  %p845_p6 = scmp.lt.s32.totalorder %s843_s16, %s836_s12 }
  0x5c   : > { %p840_p9 = pneg %p839_p1  ;;  %p846_p10 = por %p845_p6, %p844_p4 }
  0x5e   : > { %p847_p3 = pnand %p846_p10, %p840_p9 }
  0x60   : > { %850 = shalt.err (!%p847_p3)
}
  0x61   : > { %691 = dma.hbm_to_vmem [thread:$0]  (!%p1192_p11), %s1188_s30, 128, %s1196_s29, %s235_s10  }
  0x62   : > { %255 = sbr.rel (%p1094_p8) target bundleno = 485 (0x1e5), region = 32  ;;  %s1226_s11 = sand.u32 (!%p1094_p8), 1, %s981_s19  }
  0x63   : > { %s1229_s15 = sshll.u32 (!%p1094_p8), %s1226_s11, 3  ;;  %s258_s17 = scalar_lea.sflag (!%p1094_p8), [#allocation3], %s1226_s11 }
  0x64   : > { %s261_s12 = scalar_lea.vmem (!%p1094_p8), [#allocation2], %s1229_s15  ;;  %p1392_p4 = scmp.ne.s32.totalorder (!%p1094_p8), %s1385_s26, 0 }
  0x69   : > { %960 = dma.done.wait (%p1392_p4), %s258_s17, 128  }
  0x6a   : > { %962 = vsyncadd (%p1392_p4), %s258_s17, 4294967168  ;;  %p1393_p9 = scmp.eq.s32.totalorder %s1073_s24, 0 }
  0x6c   : > { %964 = dma.done.wait (%p1393_p9), [#allocation6], 528   ;;  %p1394_p8 = pmov %p1393_p9 }
  0x6d   : > { %v1004_v0 = vmov 0.0|0.0   ;;  %vm1005_vm0 = vmmov 0   ;;  %v1006_v1 = vmov 0.0   ;;  %v307_v2 = vld [vmem:[#allocation5] sm:$0xff]  ;;  %v308_v3 = vld [vmem:[#allocation5 + $0x8] sm:$0xff]  ;;  %v309_v4 = vld [vmem:[#allocation5 + $0x10] sm:$0xff] }
  0x6e   : > { %966 = vsyncadd (%p1394_p8), [#allocation6], 4294966768  ;;  %659 = vmatprep.subr.bf16.mxu0 %v1004_v0  ;;  %656 = vmatprep.mubr.msk.f32.mxu0 %vm1005_vm0, %v1006_v1  ;;  %v660_v5 = vpack.c.bf16 %v308_v3, %v307_v2  ;;  %v310_v6 = vld [vmem:[#allocation5 + $0x18] sm:$0xff]  ;;  %vm318_vm1 = vcmask 261120   ;;  %v633_v9 = vld [vmem:[#allocation7] ss:$0 sm:$0xff] }
  0x6f   : > { %v663_v7 = vpack.c.bf16 %v310_v6, %v309_v4  ;;  %v306_v8 = vld [vmem:[%s261_s12] sm:$0xff]  ;;  %s1243_s26 = sshll.u32 %s989_s21, 7  ;;  %s291_s28 = scalar_lea.vmem [#allocation8], %s1229_s15 }
  0x70   : > { %661 = vmatpush3.bf16.msra.mxu0 %v660_v5  ;;  %s428_s30 = sshll.u32 %s291_s28, 4  ;;  %s1007_s29 = smov 96   ;;  %s1252_s30 = int_to_ptr.vmem [resolvable:$true] %s428_s30 }
  0x71   : > { %662 = vmatprep.subr.bf16.mxu0 %v1004_v0  ;;  %s1250_s8 = scalar_lea.hbm %s1379_s3, %s1243_s26  ;;  %s404_s21 = scalar_lea.sflag [#allocation4], %s1226_s11 }
  0x72   : > { %s851_s13 = scalar_lea.vmem %s1252_s30, 128  ;;  %p1395_p2 = scmp.ne.s32.totalorder %s1390_s6, 0 }
  0x73   : > { %p852_p11 = scmp.ne.s32.totalorder %s1252_s30, %s851_s13  ;;  %s1008_s16 = smov [#allocation8]  }
  0x74   : > { %664 = vmatpush3.bf16.msra.mxu0 %v663_v7  ;;  %s855_s17 = sshll.u32 %s1008_s16, 4  ;;  %s856_s17 = int_to_ptr.vmem [resolvable:$false] %s855_s17 }
  0x75   : > { %p853_p13 = pnand %p852_p11, %p1395_p2  ;;  %s857_s12 = scalar_lea.vmem %s856_s17, 256 }
  0x76   : > { %p858_p7 = scmp.lt.s32.totalorder %s1252_s30, %s856_s17  ;;  %p859_p12 = scmp.lt.s32.totalorder %s857_s12, %s851_s13 }
  0x77   : > { %657 = vmatmul.mubr.msk.f32.vlgmr.msra.gmra.mrb[0].mxu0 %vm318_vm1, %v306_v8  ;;  %p854_p5 = pneg %p853_p13 }
  0x78   : > { %p860_p0 = por %p859_p12, %p858_p7 }
  0x7a   : > { %p861_p1 = pnand %p860_p0, %p854_p5 }
 0x14a   : > { %v388_v10 = vpop.f32.mrb[0].mxu0 }
 0x14b   : > { %v389_v11 = vadd.f32 %v633_v9, %v388_v10  ;;  %v658_v12 = vpop.f32.mrb[1].mxu0 }
 0x14d   : > { %v392_v13 = vmul.f32 0.35355338, %v389_v11  ;;  %395 = vrot.lane.b32.xlu0 %v389_v11, %s1007_s29 }
 0x14f   : > { %393 = vst.msk [vmem:[%s291_s28] sm:$0xff] %vm318_vm1, %v392_v13 }
 0x150   : > { %864 = shalt.err (!%p861_p1)
}
 0x151   : > { %s865_s11 = scalar_lea.hbm %s1250_s8, 128  ;;  %s869_s7 = scalar_lea.hbm %s1379_s3, 256 }
 0x152   : > { %p866_p6 = scmp.ne.s32.totalorder %s1250_s8, %s865_s11  ;;  %p870_p4 = scmp.lt.u32.totalorder %s1250_s8, %s1379_s3 }
 0x153   : > { %p871_p9 = scmp.lt.u32.totalorder %s869_s7, %s865_s11  ;;  %p873_p11 = scmp.lt.u32.totalorder %s865_s11, %s1250_s8 }
 0x154   : > { %p867_p10 = pnand %p866_p6, %p1395_p2 }
 0x155   : > { %p872_p8 = por %p871_p9, %p870_p4 }
 0x156   : > { %p868_p3 = pneg %p867_p10 }
 0x157   : > { %p874_p13 = por %p873_p11, %p872_p8 }
 0x159   : > { %p875_p5 = pnand %p874_p13, %p868_p3 }
 0x15b   : > { %878 = shalt.err (!%p875_p5)
}
 0x15c   : > { %675 = dma.vmem_to_hbm [thread:$0]  (%p1395_p2), %s1252_s30, 128, %s1250_s8, %s404_s21  }
 0x15d   : > { %s1009_s13 = smov 64   ;;  %s408_s17 = sand.u32 1, %s1073_s24  }
 0x15e   : > { %399 = vrot.lane.b32.xlu0 %v389_v11, %s1009_s13  ;;  %s298_s12 = scalar_lea.vmem [#allocation9], %s1229_s15  ;;  %s1283_s7 = scalar_lea.hbm %s1380_s4, %s1243_s26 }
 0x15f   : > { %s442_s28 = sshll.u32 %s298_s12, 4  ;;  %s305_s10 = scalar_lea.vmem [#allocation11], %s1229_s15  ;;  %s1285_s28 = int_to_ptr.vmem [resolvable:$true] %s442_s28 }
 0x160   : > { %s1290_s16 = sshll.u32 %s305_s10, 4  ;;  %s1293_s24 = scalar_lea.sflag [#allocation10], %s408_s17  ;;  %s1324_s16 = int_to_ptr.vmem [resolvable:$true] %s1290_s16 }
 0x161   : > { %s879_s30 = scalar_lea.vmem %s1285_s28, 128  ;;  %s1010_s8 = smov [#allocation9]  }
 0x162   : > { %p880_p7 = scmp.ne.s32.totalorder %s1285_s28, %s879_s30  ;;  %s883_s21 = sshll.u32 %s1010_s8, 4  ;;  %s884_s21 = int_to_ptr.vmem [resolvable:$false] %s883_s21 }
 0x163   : > { %s885_s13 = scalar_lea.vmem %s884_s21, 256  ;;  %p886_p1 = scmp.lt.s32.totalorder %s1285_s28, %s884_s21 }
 0x164   : > { %p881_p12 = pnand %p880_p7, %p1395_p2  ;;  %p887_p6 = scmp.lt.s32.totalorder %s885_s13, %s879_s30 }
 0x166   : > { %p882_p0 = pneg %p881_p12  ;;  %p888_p10 = por %p887_p6, %p886_p1 }
 0x168   : > { %p889_p3 = pnand %p888_p10, %p882_p0 }
 0x1bf   : > { %v396_v14 = vpop.permute.xlu0 %395 }
 0x1c0   : > { %398 = vst.msk [vmem:[%s298_s12] sm:$0xff] %vm318_vm1, %v396_v14 }
 0x1c1   : > { %892 = shalt.err (!%p889_p3)
}
 0x1c2   : > { %s893_s17 = scalar_lea.hbm %s1283_s7, 128  ;;  %s897_s29 = scalar_lea.hbm %s1380_s4, 256 }
 0x1c3   : > { %p894_p4 = scmp.ne.s32.totalorder %s1283_s7, %s893_s17  ;;  %p898_p11 = scmp.lt.u32.totalorder %s1283_s7, %s1380_s4 }
 0x1c4   : > { %p899_p13 = scmp.lt.u32.totalorder %s897_s29, %s893_s17  ;;  %p901_p7 = scmp.lt.u32.totalorder %s893_s17, %s1283_s7 }
 0x1c5   : > { %p895_p9 = pnand %p894_p4, %p1395_p2 }
 0x1c6   : > { %p900_p5 = por %p899_p13, %p898_p11 }
 0x1c7   : > { %p896_p8 = pneg %p895_p9 }
 0x1c8   : > { %p902_p12 = por %p901_p7, %p900_p5 }
 0x1ca   : > { %p903_p0 = pnand %p902_p12, %p896_p8 }
 0x1cc   : > { %906 = shalt.err (!%p903_p0)
}
 0x1cd   : > { %676 = dma.vmem_to_hbm [thread:$0]  (%p1395_p2), %s1285_s28, 128, %s1283_s7, %s1293_s24  }
 0x1ce   : > { %s1321_s12 = scalar_lea.hbm %s1381_s5, %s1243_s26  ;;  %s907_s17 = scalar_lea.vmem %s1324_s16, 128 }
 0x1cf   : > { %p908_p1 = scmp.ne.s32.totalorder %s1324_s16, %s907_s17  ;;  %s1011_s28 = smov [#allocation11]  }
 0x1d0   : > { %v400_v15 = vpop.permute.xlu0 %399  ;;  %s911_s7 = sshll.u32 %s1011_s28, 4  ;;  %s912_s7 = int_to_ptr.vmem [resolvable:$false] %s911_s7 }
 0x1d1   : > { %402 = vst.msk [vmem:[%s305_s10] sm:$0xff] %vm318_vm1, %v400_v15  ;;  %p909_p6 = pnand %p908_p1, %p1395_p2  ;;  %s913_s11 = scalar_lea.vmem %s912_s7, 256 }
 0x1d2   : > { %p914_p3 = scmp.lt.s32.totalorder %s1324_s16, %s912_s7  ;;  %p915_p4 = scmp.lt.s32.totalorder %s913_s11, %s907_s17 }
 0x1d3   : > { %p910_p10 = pneg %p909_p6 }
 0x1d4   : > { %p916_p9 = por %p915_p4, %p914_p3 }
 0x1d6   : > { %p917_p8 = pnand %p916_p9, %p910_p10 }
 0x1d8   : > { %920 = shalt.err (!%p917_p8)
}
 0x1d9   : > { %s921_s15 = scalar_lea.hbm %s1321_s12, 128  ;;  %s925_s29 = scalar_lea.hbm %s1381_s5, 256 }
 0x1da   : > { %p922_p11 = scmp.ne.s32.totalorder %s1321_s12, %s921_s15  ;;  %p926_p7 = scmp.lt.u32.totalorder %s1321_s12, %s1381_s5 }
 0x1db   : > { %p927_p12 = scmp.lt.u32.totalorder %s925_s29, %s921_s15  ;;  %p929_p1 = scmp.lt.u32.totalorder %s921_s15, %s1321_s12 }
 0x1dc   : > { %p923_p13 = pnand %p922_p11, %p1395_p2 }
 0x1dd   : > { %p928_p0 = por %p927_p12, %p926_p7 }
 0x1de   : > { %p924_p5 = pneg %p923_p13 }
 0x1df   : > { %p930_p6 = por %p929_p1, %p928_p0 }
 0x1e1   : > { %p931_p10 = pnand %p930_p6, %p924_p5 }
 0x1e3   : > { %934 = shalt.err (!%p931_p10)
}
 0x1e4   : > { %677 = dma.vmem_to_hbm [thread:$0]  (%p1395_p2), %s1324_s16, 128, %s1321_s12, %s1293_s24  }
 0x1e5 PF: > { %s468_s30 = sand.u32 1, %s977_s18   ;;  %p1396_p3 = scmp.ne.s32.totalorder %s1386_s27, 0 }
 0x1e6   : > { %p1397_p4 = scmp.ge.s32.totalorder %s997_s23, 2  ;;  %s469_s13 = scalar_lea.sflag [#allocation4], %s468_s30 }
 0x1e8   : > { %p693_p9 = pnand %p1397_p4, %p1396_p3 }
 0x1ea   : > { %968 = dma.done.wait (!%p693_p9), %s469_s13, 128  }
 0x1eb   : > { %970 = vsyncadd (!%p693_p9), %s469_s13, 4294967168  ;;  %s477_s17 = sand.u32 1, %s619_s25  }
 0x1ec   : > { %s478_s28 = scalar_lea.sflag [#allocation10], %s477_s17 }
 0x1ed   : > { %972 = dma.done.wait (!%p693_p9), %s478_s28, 256  }
 0x1ee   : > { %974 = vsyncadd (!%p693_p9), %s478_s28, 4294967040  ;;  %s26_s23 = sadd.s32 1, %s997_s23   ;;  %s1398_s18 = smov %s981_s19 }
 0x1ef   : > { %p23_p2 = scmp.ge.s32.totalorder %s26_s23, 4   ;;  %s1399_s19 = smov %s985_s20 }
 0x1f0   : > { %s1400_s20 = smov %s1183_s14  ;;  %s1401_s21 = smov %s993_s22 }
 0x1f1   : > { %s1402_s22 = smov %s1404_s9  ;;  %25 = sbr.rel (!%p23_p2) target bundleno = 9 (0x9), region = 117 }
 0x1f8   :  { %492 = vsyncpa [#allocation3], 1 }
 0x1f9   :  { %494 = vsyncpa [#allocation3 + $0x1], 1 }
 0x1fa   :  { %495 = vsyncpa [#allocation6], 1 }
 0x1fb   :  { %496 = vsyncpa [#allocation4], 1 }
 0x1fc   :  { %498 = vsyncpa [#allocation4 + $0x1], 1 }
 0x1fd   :  { %499 = vsyncpa [#allocation10], 1 }
 0x1fe   :  { %501 = vsyncpa [#allocation10 + $0x1], 1 }

</bundles_post_ra>
